<compile_context>
chip_gen: v5e
topology: v5e:2x2
jax: 0.10.0
libtpu: 0.0.40
codegen_flags: <defaults>
</compile_context>

<pallas_src>
import functools

import jax
import jax.numpy as jnp
from jax.experimental import pallas as pl
from jax.experimental.pallas import tpu as pltpu


def _round_up(x, m):
    return ((x + m - 1) // m) * m


# --------------------------------------------------------------------------
# Pallas kernel: one RGCN layer
#   grid = (N_pad // TM, R)   dst-tile axis "parallel", relation "arbitrary"
# --------------------------------------------------------------------------
def _rgcn_layer_kernel(a_ref, h_ref, w_ref, wself_ref, o_ref, *, tile_m):
    i = pl.program_id(0)          # dst tile index
    r = pl.program_id(1)          # relation (reduction) index

    # Initialize the resident f32 output block with the self-loop term.
    @pl.when(r == 0)
    def _():
        row0 = pl.multiple_of(i * tile_m, tile_m)
        h_tile = h_ref[pl.ds(row0, tile_m), :]            # bf16 [TM, D_in]
        o_ref[...] = jnp.dot(
            h_tile, wself_ref[...], preferred_element_type=jnp.float32
        )

    # Message passing for relation r:  (A_r[tile] @ H) @ W_r  (bf16 MXU, f32 acc)
    ah = jnp.dot(a_ref[0], h_ref[...], preferred_element_type=jnp.float32)
    o_ref[...] += jnp.dot(
        ah.astype(w_ref.dtype), w_ref[r], preferred_element_type=jnp.float32
    )

    # Finalize: ReLU (RGCNBase.forward applies it after every layer).
    @pl.when(r == pl.num_programs(1) - 1)
    def _():
        o_ref[...] = jnp.maximum(o_ref[...], 0.0)


def _pick_tile_m(n_pad, d_in, d_out, num_rel, budget_bytes=24 * 1024 * 1024):
    """Largest TM in {1024,512,256,128} whose (double-buffered) VMEM fits."""
    for tm in (1024, 512, 256, 128):
        if tm > n_pad or n_pad % tm != 0:
            continue
        need = (
            2 * tm * n_pad * 2            # A tile (bf16, double buffered)
            + 2 * n_pad * d_in * 2        # resident H (bf16)
            + 2 * num_rel * d_in * d_out * 2  # resident W (bf16)
            + 2 * d_in * d_out * 2        # resident W_self (bf16)
            + 2 * tm * d_out * 4          # f32 output block
        )
        if need <= budget_bytes:
            return tm
    return 128


def rgcn_layer(adj_bf16, h_bf16, w_rel_bf16, w_self_bf16, *, tile_m):
    """One RGCN layer + ReLU, fully inside a Pallas kernel (padded shapes)."""
    num_rel, n_pad, _ = adj_bf16.shape
    d_in, d_out = w_self_bf16.shape
    assert h_bf16.shape == (n_pad, d_in)
    assert w_rel_bf16.shape == (num_rel, d_in, d_out)
    assert n_pad % tile_m == 0

    kernel = functools.partial(_rgcn_layer_kernel, tile_m=tile_m)
    return pl.pallas_call(
        kernel,
        out_shape=jax.ShapeDtypeStruct((n_pad, d_out), jnp.float32),
        grid_spec=pltpu.PrefetchScalarGridSpec(
            num_scalar_prefetch=0,
            grid=(n_pad // tile_m, num_rel),
            in_specs=[
                # A: one (relation, dst-tile) slab [1, TM, N_pad] per step.
                pl.BlockSpec((1, tile_m, n_pad), lambda i, r: (r, i, 0)),
                # H: resident across the whole grid.
                pl.BlockSpec((n_pad, d_in), lambda i, r: (0, 0)),
                # W: whole per-relation weight tensor resident; indexed in-kernel.
                pl.BlockSpec((num_rel, d_in, d_out), lambda i, r: (0, 0, 0)),
                # W_self: resident.
                pl.BlockSpec((d_in, d_out), lambda i, r: (0, 0)),
            ],
            # Output block constant across r -> resident f32 accumulator.
            out_specs=pl.BlockSpec((tile_m, d_out), lambda i, r: (i, 0)),
        ),
        compiler_params=pltpu.CompilerParams(
            dimension_semantics=("parallel", "arbitrary"),
            vmem_limit_bytes=32 * 1024 * 1024,
        ),
    )(adj_bf16, h_bf16, w_rel_bf16, w_self_bf16)


# --------------------------------------------------------------------------
# Plain-JAX glue: edge list -> dense row-normalized relational adjacency
# --------------------------------------------------------------------------
def build_normalized_adjacency(edges, num_relation, num_entity):
    """edges: int32 [E, 3] rows of (src, rel, dst)."""
    src = edges[:, 0]
    rel = edges[:, 1]
    dst = edges[:, 2]
    adj = jnp.zeros((num_relation, num_entity, num_entity), jnp.float32)
    adj = adj.at[rel, dst, src].add(1.0)
    deg = adj.sum(axis=-1, keepdims=True)          # in-degree per (rel, dst)
    adj = adj / jnp.maximum(deg, 1.0)              # 1 / c_{v,r} normalization
    return adj


# --------------------------------------------------------------------------
# RGCNBase equivalent
# --------------------------------------------------------------------------
class RGCNBaseParams:
    """Deterministic parameter container mirroring RGCNBase.__init__ shapes."""

    def __init__(self, dim_list, num_relation, num_entity, key):
        if len(dim_list) < 2:
            raise Exception("At least have two dimension!")
        self.dims = dim_list
        self.num_relation = num_relation
        self.num_entity = num_entity

        keys = jax.random.split(key, 1 + 2 * (len(dim_list) - 1))
        # nn.Embedding(num_entity, dim_list[0]) -> weight ~ N(0, 1)
        self.entity_embed = jax.random.normal(
            keys[0], (num_entity, dim_list[0]), jnp.float32
        )
        self.layer_w_rel = []
        self.layer_w_self = []
        for i in range(len(dim_list) - 1):
            d_in, d_out = dim_list[i], dim_list[i + 1]
            scale = 1.0 / jnp.sqrt(jnp.float32(d_in))
            w_rel = scale * jax.random.normal(
                keys[1 + 2 * i], (num_relation, d_in, d_out), jnp.float32
            )
            w_self = scale * jax.random.normal(
                keys[2 + 2 * i], (d_in, d_out), jnp.float32
            )
            self.layer_w_rel.append(w_rel)
            self.layer_w_self.append(w_self)


@functools.partial(jax.jit, static_argnames=("num_relation", "num_entity"))
def rgcn_base_forward(edges, entity_embed, layer_w_rel, layer_w_self,
                      *, num_relation, num_entity, h_input=None):
    if h_input is None:
        h_input = entity_embed                      # self.entity_embed.weight
    adj = build_normalized_adjacency(edges, num_relation, num_entity)

    # Pad entity axis and cast the adjacency to bf16 (dominant HBM stream).
    n_pad = _round_up(num_entity, 128)
    adj_p = jnp.zeros((num_relation, n_pad, n_pad), jnp.bfloat16)
    adj_p = adj_p.at[:, :num_entity, :num_entity].set(adj.astype(jnp.bfloat16))

    # Pad features to a lane-dense (multiple-of-128) width.
    d0 = h_input.shape[1]
    d0_p = _round_up(d0, 128)
    h = jnp.zeros((n_pad, d0_p), jnp.float32)
    h = h.at[:num_entity, :d0].set(h_input)

    for w_rel, w_self in zip(layer_w_rel, layer_w_self):
        d_in, d_out = w_self.shape
        d_in_p, d_out_p = _round_up(d_in, 128), _round_up(d_out, 128)

        w_rel_p = jnp.zeros((num_relation, d_in_p, d_out_p), jnp.bfloat16)
        w_rel_p = w_rel_p.at[:, :d_in, :d_out].set(w_rel.astype(jnp.bfloat16))
        w_self_p = jnp.zeros((d_in_p, d_out_p), jnp.bfloat16)
        w_self_p = w_self_p.at[:d_in, :d_out].set(w_self.astype(jnp.bfloat16))

        tile_m = _pick_tile_m(n_pad, d_in_p, d_out_p, num_relation)
        h = rgcn_layer(adj_p, h.astype(jnp.bfloat16), w_rel_p, w_self_p,
                       tile_m=tile_m)              # f32 [n_pad, d_out_p]
        # Padded rows/cols stay exactly zero (ReLU(0)=0), so chaining is safe.

    d_out_final = layer_w_self[-1].shape[1]
    return h[:num_entity, :d_out_final]


# --------------------------------------------------------------------------
# Pure-JAX f32 reference (for a quick sanity check)
# --------------------------------------------------------------------------
def rgcn_base_reference(edges, entity_embed, layer_w_rel, layer_w_self,
                        num_relation, num_entity):
    adj = build_normalized_adjacency(edges, num_relation, num_entity)
    h = entity_embed
    for w_rel, w_self in zip(layer_w_rel, layer_w_self):
        msg = jnp.einsum("rvu,ud->rvd", adj, h)
        agg = jnp.einsum("rvd,rde->ve", msg, w_rel)
        h = jax.nn.relu(agg + h @ w_self)
    return h


if __name__ == "__main__":
    # Small deterministic problem.
    dim_list = [32, 64, 32]
    num_relation = 4
    num_entity = 64
    num_edges = 128

    key = jax.random.PRNGKey(0)
    k_param, k_src, k_rel, k_dst = jax.random.split(key, 4)

    params = RGCNBaseParams(dim_list, num_relation, num_entity, k_param)

    src = jax.random.randint(k_src, (num_edges,), 0, num_entity, jnp.int32)
    rel = jax.random.randint(k_rel, (num_edges,), 0, num_relation, jnp.int32)
    dst = jax.random.randint(k_dst, (num_edges,), 0, num_entity, jnp.int32)
    edges = jnp.stack([src, rel, dst], axis=1)       # [E, 3] (src, rel, dst)

    out = rgcn_base_forward(
        edges,
        params.entity_embed,
        tuple(params.layer_w_rel),
        tuple(params.layer_w_self),
        num_relation=num_relation,
        num_entity=num_entity,
    )
    out = jax.block_until_ready(out)

    ref = rgcn_base_reference(
        edges, params.entity_embed, params.layer_w_rel, params.layer_w_self,
        num_relation, num_entity,
    )
    assert out.shape == (num_entity, dim_list[-1])
    # bf16 MXU operands + f32 accumulation -> relaxed tolerance vs f32 ref.
    rel_err = jnp.max(jnp.abs(out - ref)) / (jnp.max(jnp.abs(ref)) + 1e-6)
    assert rel_err < 0.05, f"mismatch vs reference, rel err = {rel_err}"

    print("KERNEL_OK")
</pallas_src>

<mosaic_0001>
module attributes {stable_mosaic.version = 11 : i64} {
  func.func @_rgcn_layer_kernel(%arg0: i32, %arg1: i32, %arg2: memref<1x128x128xbf16, #tpu.memory_space<vmem>>, %arg3: memref<128x128xbf16, #tpu.memory_space<vmem>>, %arg4: memref<4x128x128xbf16, #tpu.memory_space<vmem>>, %arg5: memref<128x128xbf16, #tpu.memory_space<vmem>>, %arg6: memref<128x128xf32, #tpu.memory_space<vmem>>) attributes {dimension_semantics = [#tpu.dimension_semantics<parallel>, #tpu.dimension_semantics<arbitrary>], iteration_bounds = array<i64: 1, 4>, scalar_prefetch = 0 : i64, scratch_operands = 0 : i64, tpu.core_type = #tpu.core_type<tc>, window_params = [{transform_indices = @transform_0, window_bounds = array<i64: 1, 128, 128>}, {pipeline_mode = #tpu.pipeline_mode<synchronous>, transform_indices = @transform_1, window_bounds = array<i64: 128, 128>}, {pipeline_mode = #tpu.pipeline_mode<synchronous>, transform_indices = @transform_2, window_bounds = array<i64: 4, 128, 128>}, {pipeline_mode = #tpu.pipeline_mode<synchronous>, transform_indices = @transform_3, window_bounds = array<i64: 128, 128>}, {transform_indices = @transform_4, window_bounds = array<i64: 128, 128>}]} {
    %c0_i32 = arith.constant 0 : i32
    %0 = arith.cmpi eq, %arg1, %c0_i32 : i32
    %1 = arith.extui %0 : i1 to i32
    %c0_i32_0 = arith.constant 0 : i32
    %2 = arith.cmpi ne, %1, %c0_i32_0 : i32
    scf.if %2 {
      %c128_i32 = arith.constant 128 : i32
      %18 = arith.muli %arg0, %c128_i32 : i32
      %19 = tpu.assume_multiple %18, 128 : i32
      %20 = arith.index_cast %19 : i32 to index
      %c0_13 = arith.constant 0 : index
      %21 = vector.load %arg3[%20, %c0_13] : memref<128x128xbf16, #tpu.memory_space<vmem>>, vector<128x128xbf16>
      %c0_14 = arith.constant 0 : index
      %c0_15 = arith.constant 0 : index
      %22 = vector.load %arg5[%c0_14, %c0_15] : memref<128x128xbf16, #tpu.memory_space<vmem>>, vector<128x128xbf16>
      %cst_16 = arith.constant dense<0.000000e+00> : vector<128x128xf32>
      %23 = tpu.matmul %21, %22, %cst_16 {dimension_numbers = #tpu.dot_dimension_numbers<[1], [0], [0], [1], [0, 0, 1, 1], [], []>} : vector<128x128xbf16>, vector<128x128xbf16>, vector<128x128xf32> -> vector<128x128xf32>
      %c0_17 = arith.constant 0 : index
      %c0_18 = arith.constant 0 : index
      %24 = vector.load %arg6[%c0_17, %c0_18] : memref<128x128xf32, #tpu.memory_space<vmem>>, vector<128x128xf32>
      tpu.vector_store %arg6[%c0_17, %c0_18], %23 {strides = array<i32>} : memref<128x128xf32, #tpu.memory_space<vmem>>, vector<128x128xf32>,
    } else {
    }
    %c0 = arith.constant 0 : index
    %c0_1 = arith.constant 0 : index
    %c0_2 = arith.constant 0 : index
    %3 = vector.load %arg2[%c0, %c0_1, %c0_2] : memref<1x128x128xbf16, #tpu.memory_space<vmem>>, vector<1x128x128xbf16>
    %4 = vector.shape_cast %3 : vector<1x128x128xbf16> to vector<128x128xbf16>
    %c0_3 = arith.constant 0 : index
    %c0_4 = arith.constant 0 : index
    %5 = vector.load %arg3[%c0_3, %c0_4] : memref<128x128xbf16, #tpu.memory_space<vmem>>, vector<128x128xbf16>
    %cst = arith.constant dense<0.000000e+00> : vector<128x128xf32>
    %6 = tpu.matmul %4, %5, %cst {dimension_numbers = #tpu.dot_dimension_numbers<[1], [0], [0], [1], [0, 0, 1, 1], [], []>} : vector<128x128xbf16>, vector<128x128xbf16>, vector<128x128xf32> -> vector<128x128xf32>
    %c0_5 = arith.constant 0 : index
    %c0_6 = arith.constant 0 : index
    %7 = vector.load %arg6[%c0_5, %c0_6] : memref<128x128xf32, #tpu.memory_space<vmem>>, vector<128x128xf32>
    %8 = arith.truncf %6 : vector<128x128xf32> to vector<128x128xbf16>
    %9 = arith.index_cast %arg1 : i32 to index
    %c0_7 = arith.constant 0 : index
    %c0_8 = arith.constant 0 : index
    %10 = vector.load %arg4[%9, %c0_7, %c0_8] : memref<4x128x128xbf16, #tpu.memory_space<vmem>>, vector<1x128x128xbf16>
    %11 = vector.shape_cast %10 : vector<1x128x128xbf16> to vector<128x128xbf16>
    %cst_9 = arith.constant dense<0.000000e+00> : vector<128x128xf32>
    %12 = tpu.matmul %8, %11, %cst_9 {dimension_numbers = #tpu.dot_dimension_numbers<[1], [0], [0], [1], [0, 0, 1, 1], [], []>} : vector<128x128xbf16>, vector<128x128xbf16>, vector<128x128xf32> -> vector<128x128xf32>
    %13 = arith.addf %7, %12 : vector<128x128xf32>
    %c0_10 = arith.constant 0 : index
    %c0_11 = arith.constant 0 : index
    %14 = vector.load %arg6[%c0_10, %c0_11] : memref<128x128xf32, #tpu.memory_space<vmem>>, vector<128x128xf32>
    tpu.vector_store %arg6[%c0_10, %c0_11], %13 {strides = array<i32>} : memref<128x128xf32, #tpu.memory_space<vmem>>, vector<128x128xf32>,
    %c3_i32 = arith.constant 3 : i32
    %15 = arith.cmpi eq, %arg1, %c3_i32 : i32
    %16 = arith.extui %15 : i1 to i32
    %c0_i32_12 = arith.constant 0 : i32
    %17 = arith.cmpi ne, %16, %c0_i32_12 : i32
    scf.if %17 {
      %c0_13 = arith.constant 0 : index
      %c0_14 = arith.constant 0 : index
      %18 = vector.load %arg6[%c0_13, %c0_14] : memref<128x128xf32, #tpu.memory_space<vmem>>, vector<128x128xf32>
      %cst_15 = arith.constant 0.000000e+00 : f32
      %19 = vector.broadcast %cst_15 : f32 to vector<128x128xf32>
      %20 = arith.maximumf %18, %19 : vector<128x128xf32>
      %c0_16 = arith.constant 0 : index
      %c0_17 = arith.constant 0 : index
      %21 = vector.load %arg6[%c0_16, %c0_17] : memref<128x128xf32, #tpu.memory_space<vmem>>, vector<128x128xf32>
      tpu.vector_store %arg6[%c0_16, %c0_17], %20 {strides = array<i32>} : memref<128x128xf32, #tpu.memory_space<vmem>>, vector<128x128xf32>,
    } else {
    }
    return
  }
  func.func @transform_0(%arg0: i32, %arg1: i32) -> (i32, i32, i32) {
    %c0_i32 = arith.constant 0 : i32
    %c0_i32_0 = arith.constant 0 : i32
    return %arg1, %arg0, %c0_i32 : i32, i32, i32
  }
  func.func @transform_1(%arg0: i32, %arg1: i32) -> (i32, i32) {
    %c0_i32 = arith.constant 0 : i32
    %c0_i32_0 = arith.constant 0 : i32
    %c0_i32_1 = arith.constant 0 : i32
    return %c0_i32, %c0_i32_0 : i32, i32
  }
  func.func @transform_2(%arg0: i32, %arg1: i32) -> (i32, i32, i32) {
    %c0_i32 = arith.constant 0 : i32
    %c0_i32_0 = arith.constant 0 : i32
    %c0_i32_1 = arith.constant 0 : i32
    %c0_i32_2 = arith.constant 0 : i32
    return %c0_i32, %c0_i32_0, %c0_i32_1 : i32, i32, i32
  }
  func.func @transform_3(%arg0: i32, %arg1: i32) -> (i32, i32) {
    %c0_i32 = arith.constant 0 : i32
    %c0_i32_0 = arith.constant 0 : i32
    %c0_i32_1 = arith.constant 0 : i32
    return %c0_i32, %c0_i32_0 : i32, i32
  }
  func.func @transform_4(%arg0: i32, %arg1: i32) -> (i32, i32) {
    %c0_i32 = arith.constant 0 : i32
    %c0_i32_0 = arith.constant 0 : i32
    return %arg0, %c0_i32 : i32, i32
  }
}

</mosaic_0001>

<bundles_post_ra>
// kernel: rgcn_base_forward.2
= control target key start
LH: loop header
LB: loop body
LE: loop exit
PB: predicated region body
PF: predicated region fallthrough
CT: control target
= control target key end

     0   :  { %s1231_s15 = smov 0   ;;  %s1233_s16 = smov 0   ;;  %s1603_s0 = inlined_call_operand.vmem [shape: bf16[4,128,128], index: 0, kind: input, shape index: {}]   ;;  %s1604_s1 = inlined_call_operand.vmem [shape: bf16[128,128], index: 1, kind: input, shape index: {}]   ;;  %s1605_s2 = inlined_call_operand.vmem [shape: bf16[4,128,128], index: 2, kind: input, shape index: {}]   ;;  %s1606_s3 = inlined_call_operand.vmem [shape: bf16[128,128], index: 3, kind: input, shape index: {}]   ;;  %s1607_s4 = inlined_call_operand.vmem [shape: f32[128,128], index: 4, kind: output, shape index: {}]  }
   0x1   :  { %s1235_s17 = smov 0  }
   0x2 LB: > { %s23_s18 = sadd.s32 1, %s1200_s16  ;;  %p905_p0 = scmp.ge.s32.totalorder %s1204_s17, 1  ;;  %s1204_s17 = sphi %s1235_s17, %s14_s17   ;;  %s1200_s16 = sphi %s1233_s16, %s1609_s16   ;;  %s1196_s15 = sphi %s1231_s15, %s1608_s15  }
   0x3   : > { %p24_p1 = scmp.ge.s32.totalorder %s23_s18, 4  ;;  %p181_p2 = scmp.lt.s32.totalorder %s1204_s17, 5 }
   0x5   : > { %s1611_s18 = smov (%p24_p1, %s23_s18), 0  ;;  %p182_p3 = pnand %p905_p0, %p181_p2 }
   0x6   : > { %p212_p4 = scmp.lt.s32.totalorder (!%p182_p3), %s1196_s15, 3  ;;  %p908_p5 = scmp.ne.s32.totalorder (!%p182_p3), %s1196_s15, 0 }
   0x7   : > { %185 = sbr.rel (%p182_p3) target bundleno = 593 (0x251), region = 36 }
   0xc   : > { %s213_s19 = scalar_select %p212_p4, %s1196_s15, 3 }
   0xd   : > { %230 = sbr.rel (%p908_p5) target bundleno = 209 (0xd1), region = 40 }
   0xe   : > { %s1076_s20 = sshll.u32 %s213_s19, 6 }
   0xf   : > { %s1256_s23 = scalar_lea.vmem %s1603_s0, %s1076_s20 }
  0x12   : > { %v1092_v0 = vld [vmem:[%s1606_s3 + $0x38] sm:$0xff]  ;;  %v1091_v1 = vld [vmem:[%s1606_s3 + $0x30] sm:$0xff]  ;;  %v1090_v2 = vld [vmem:[%s1606_s3 + $0x28] sm:$0xff] }
  0x13   : > { %364 = vmatpush.bf16.msra.mxu0 %v1092_v0  ;;  %1118 = vmatpush.bf16.msra.mxu1 %v1092_v0  ;;  %v1089_v3 = vld [vmem:[%s1606_s3 + $0x20] sm:$0xff]  ;;  %v1088_v4 = vld [vmem:[%s1606_s3 + $0x18] sm:$0xff]  ;;  %v1087_v5 = vld [vmem:[%s1606_s3 + $0x10] sm:$0xff] }
  0x14   : > { %1119 = vmatpush.bf16.msra.mxu2 %v1092_v0  ;;  %1120 = vmatpush.bf16.msra.mxu3 %v1092_v0  ;;  %v1086_v6 = vld [vmem:[%s1606_s3 + $0x8] sm:$0xff]  ;;  %v1085_v7 = vld [vmem:[%s1606_s3] sm:$0xff]  ;;  %v1079_v9 = vld [vmem:[%s1604_s1 + $0x10] sm:$0xff] }
  0x15   : > { %v1077_v8 = vld [vmem:[%s1604_s1] sm:$0xff]  ;;  %v1083_v11 = vld [vmem:[%s1604_s1 + $0x30] sm:$0xff]  ;;  %v1078_v12 = vld [vmem:[%s1604_s1 + $0x8] sm:$0xff] }
  0x16   : > { %v1081_v10 = vld [vmem:[%s1604_s1 + $0x20] sm:$0xff]  ;;  %v1080_v13 = vld [vmem:[%s1604_s1 + $0x18] sm:$0xff]  ;;  %v1082_v14 = vld [vmem:[%s1604_s1 + $0x28] sm:$0xff] }
  0x17   : > { %365 = vmatpush.bf16.msra.mxu0 %v1091_v1  ;;  %1121 = vmatpush.bf16.msra.mxu1 %v1091_v1  ;;  %v1084_v15 = vld [vmem:[%s1604_s1 + $0x38] sm:$0xff] }
  0x18   : > { %1122 = vmatpush.bf16.msra.mxu2 %v1091_v1  ;;  %1123 = vmatpush.bf16.msra.mxu3 %v1091_v1 }
  0x1b   : > { %366 = vmatpush.bf16.msra.mxu0 %v1090_v2  ;;  %1124 = vmatpush.bf16.msra.mxu1 %v1090_v2 }
  0x1c   : > { %1125 = vmatpush.bf16.msra.mxu2 %v1090_v2  ;;  %1126 = vmatpush.bf16.msra.mxu3 %v1090_v2 }
  0x1f   : > { %367 = vmatpush.bf16.msra.mxu0 %v1089_v3  ;;  %1127 = vmatpush.bf16.msra.mxu1 %v1089_v3 }
  0x20   : > { %1128 = vmatpush.bf16.msra.mxu2 %v1089_v3  ;;  %1129 = vmatpush.bf16.msra.mxu3 %v1089_v3 }
  0x23   : > { %368 = vmatpush.bf16.msra.mxu0 %v1088_v4  ;;  %1130 = vmatpush.bf16.msra.mxu1 %v1088_v4 }
  0x24   : > { %1131 = vmatpush.bf16.msra.mxu2 %v1088_v4  ;;  %1132 = vmatpush.bf16.msra.mxu3 %v1088_v4 }
  0x27   : > { %369 = vmatpush.bf16.msra.mxu0 %v1087_v5  ;;  %1133 = vmatpush.bf16.msra.mxu1 %v1087_v5 }
  0x28   : > { %1134 = vmatpush.bf16.msra.mxu2 %v1087_v5  ;;  %1135 = vmatpush.bf16.msra.mxu3 %v1087_v5 }
  0x2b   : > { %370 = vmatpush.bf16.msra.mxu0 %v1086_v6  ;;  %1136 = vmatpush.bf16.msra.mxu1 %v1086_v6 }
  0x2c   : > { %1137 = vmatpush.bf16.msra.mxu2 %v1086_v6  ;;  %1138 = vmatpush.bf16.msra.mxu3 %v1086_v6 }
  0x2f   : > { %371 = vmatpush.bf16.msra.mxu0 %v1085_v7  ;;  %1139 = vmatpush.bf16.msra.mxu1 %v1085_v7 }
  0x30   : > { %1140 = vmatpush.bf16.msra.mxu2 %v1085_v7  ;;  %1141 = vmatpush.bf16.msra.mxu3 %v1085_v7 }
  0x32   : > { %372 = vmatmul.bf16.vlgmr.msra.gmra.mxu0 %v1077_v8  ;;  %382 = vmatmul.bf16.vlgmr.msra.gmra.mxu1 %v1079_v9 }
  0x33   : > { %392 = vmatmul.bf16.vlgmr.msra.gmra.mxu2 %v1081_v10  ;;  %402 = vmatmul.bf16.vlgmr.msra.gmra.mxu3 %v1083_v11 }
  0x42   : > { %377 = vmatmul.bf16.gmra.mxu0 %v1078_v12  ;;  %387 = vmatmul.bf16.gmra.mxu1 %v1080_v13 }
  0x43   : > { %397 = vmatmul.bf16.gmra.mxu2 %v1082_v14  ;;  %407 = vmatmul.bf16.gmra.mxu3 %v1084_v15 }
  0xaf   : > { %v373_v16 = vpop.f32.mrf.mxu0  ;;  %v383_v17 = vpop.f32.mrf.mxu1 }
  0xb0   : > { %413 = vst [vmem:[%s1607_s4] sm:$0xff] %v373_v16 }
  0xb1   : > { %417 = vst [vmem:[%s1607_s4 + $0x20] sm:$0xff] %v383_v17 }
  0xb6   : > { %v393_v18 = vpop.f32.mrf.mxu2  ;;  %v403_v19 = vpop.f32.mrf.mxu3 }
  0xb7   : > { %421 = vst [vmem:[%s1607_s4 + $0x40] sm:$0xff] %v393_v18  ;;  %v375_v20 = vpop.f32.mrf.mxu0  ;;  %v385_v21 = vpop.f32.mrf.mxu1 }
  0xb8   : > { %425 = vst [vmem:[%s1607_s4 + $0x60] sm:$0xff] %v403_v19 }
  0xb9   : > { %414 = vst [vmem:[%s1607_s4 + $0x8] sm:$0xff] %v375_v20 }
  0xba   : > { %418 = vst [vmem:[%s1607_s4 + $0x28] sm:$0xff] %v385_v21 }
  0xbe   : > { %v395_v22 = vpop.f32.mrf.mxu2  ;;  %v405_v23 = vpop.f32.mrf.mxu3 }
  0xbf   : > { %422 = vst [vmem:[%s1607_s4 + $0x48] sm:$0xff] %v395_v22  ;;  %v378_v24 = vpop.f32.mrf.mxu0  ;;  %v388_v25 = vpop.f32.mrf.mxu1 }
  0xc0   : > { %426 = vst [vmem:[%s1607_s4 + $0x68] sm:$0xff] %v405_v23 }
  0xc1   : > { %415 = vst [vmem:[%s1607_s4 + $0x10] sm:$0xff] %v378_v24 }
  0xc2   : > { %419 = vst [vmem:[%s1607_s4 + $0x30] sm:$0xff] %v388_v25 }
  0xc6   : > { %v398_v26 = vpop.f32.mrf.mxu2  ;;  %v408_v27 = vpop.f32.mrf.mxu3 }
  0xc7   : > { %423 = vst [vmem:[%s1607_s4 + $0x50] sm:$0xff] %v398_v26  ;;  %v380_v28 = vpop.f32.mrf.mxu0  ;;  %v390_v29 = vpop.f32.mrf.mxu1 }
  0xc8   : > { %427 = vst [vmem:[%s1607_s4 + $0x70] sm:$0xff] %v408_v27 }
  0xc9   : > { %416 = vst [vmem:[%s1607_s4 + $0x18] sm:$0xff] %v380_v28 }
  0xca   : > { %420 = vst [vmem:[%s1607_s4 + $0x38] sm:$0xff] %v390_v29 }
  0xce   : > { %v400_v30 = vpop.f32.mrf.mxu2  ;;  %v410_v31 = vpop.f32.mrf.mxu3 }
  0xcf   : > { %424 = vst [vmem:[%s1607_s4 + $0x58] sm:$0xff] %v400_v30 }
  0xd0   : > { %428 = vst [vmem:[%s1607_s4 + $0x78] sm:$0xff] %v410_v31 }
  0xd1 PF: > { %v1108_v32 = vld [vmem:[%s1604_s1 + $0x38] sm:$0xff]  ;;  %v1107_v33 = vld [vmem:[%s1604_s1 + $0x30] sm:$0xff]  ;;  %v1106_v34 = vld [vmem:[%s1604_s1 + $0x28] sm:$0xff]  ;;  %s1109_s19 = sshll.u32 %s1196_s15, 6  ;;  %p1071_p6 = scmp.ne.s32.totalorder %s1196_s15, 3 }
  0xd2   : > { %557 = vmatpush.bf16.msra.mxu0 %v1108_v32  ;;  %1142 = vmatpush.bf16.msra.mxu2 %v1108_v32  ;;  %v1105_v35 = vld [vmem:[%s1604_s1 + $0x20] sm:$0xff]  ;;  %v1104_v36 = vld [vmem:[%s1604_s1 + $0x18] sm:$0xff]  ;;  %v1103_v37 = vld [vmem:[%s1604_s1 + $0x10] sm:$0xff]  ;;  %s1387_s22 = scalar_lea.vmem %s1605_s2, %s1109_s19 }
  0xd3   : > { %v1102_v38 = vld [vmem:[%s1604_s1 + $0x8] sm:$0xff]  ;;  %v1101_v39 = vld [vmem:[%s1604_s1] sm:$0xff]  ;;  %v1117_v44 = vld [vmem:[%s1387_s22 + $0x38] sm:$0xff] }
  0xd4   : > { %v1093_v40 = vld [vmem:[%s1256_s23] sm:$0xff]  ;;  %v1094_v42 = vld [vmem:[%s1256_s23 + $0x8] sm:$0xff]  ;;  %697 = vmatpush.bf16.msra.mxu1 %v1117_v44  ;;  %v1116_v45 = vld [vmem:[%s1387_s22 + $0x30] sm:$0xff]  ;;  %1150 = vmatpush.bf16.msra.mxu3 %v1117_v44 }
  0xd5   : > { %v1097_v41 = vld [vmem:[%s1256_s23 + $0x20] sm:$0xff]  ;;  %v1098_v43 = vld [vmem:[%s1256_s23 + $0x28] sm:$0xff]  ;;  %v1095_v48 = vld [vmem:[%s1256_s23 + $0x10] sm:$0xff] }
  0xd6   : > { %558 = vmatpush.bf16.msra.mxu0 %v1107_v33  ;;  %1143 = vmatpush.bf16.msra.mxu2 %v1107_v33  ;;  %v1115_v46 = vld [vmem:[%s1387_s22 + $0x28] sm:$0xff]  ;;  %v1114_v47 = vld [vmem:[%s1387_s22 + $0x20] sm:$0xff]  ;;  %v1099_v49 = vld [vmem:[%s1256_s23 + $0x30] sm:$0xff] }
  0xd7   : > { %v1113_v50 = vld [vmem:[%s1387_s22 + $0x18] sm:$0xff]  ;;  %v1112_v53 = vld [vmem:[%s1387_s22 + $0x10] sm:$0xff]  ;;  %v1111_v54 = vld [vmem:[%s1387_s22 + $0x8] sm:$0xff] }
  0xd8   : > { %698 = vmatpush.bf16.msra.mxu1 %v1116_v45  ;;  %1151 = vmatpush.bf16.msra.mxu3 %v1116_v45  ;;  %v1096_v51 = vld [vmem:[%s1256_s23 + $0x18] sm:$0xff]  ;;  %v1110_v55 = vld [vmem:[%s1387_s22] sm:$0xff]  ;;  %v607_v19 = vld [vmem:[%s1607_s4 + $0x8] sm:$0xff] }
  0xd9   : > { %v1100_v52 = vld [vmem:[%s1256_s23 + $0x38] sm:$0xff]  ;;  %v606_v16 = vld [vmem:[%s1607_s4] sm:$0xff]  ;;  %v608_v25 = vld [vmem:[%s1607_s4 + $0x10] sm:$0xff] }
  0xda   : > { %559 = vmatpush.bf16.msra.mxu0 %v1106_v34  ;;  %1144 = vmatpush.bf16.msra.mxu2 %v1106_v34  ;;  %v614_v22 = vld [vmem:[%s1607_s4 + $0x40] sm:$0xff]  ;;  %v615_v28 = vld [vmem:[%s1607_s4 + $0x48] sm:$0xff]  ;;  %v609_v31 = vld [vmem:[%s1607_s4 + $0x18] sm:$0xff] }
  0xdb   : > { %v616_v34 = vld [vmem:[%s1607_s4 + $0x50] sm:$0xff] }
  0xdc   : > { %699 = vmatpush.bf16.msra.mxu1 %v1115_v46  ;;  %1152 = vmatpush.bf16.msra.mxu3 %v1115_v46  ;;  %v618_v46 = vld [vmem:[%s1607_s4 + $0x60] sm:$0xff] }
  0xde   : > { %560 = vmatpush.bf16.msra.mxu0 %v1105_v35  ;;  %1145 = vmatpush.bf16.msra.mxu2 %v1105_v35 }
  0xe0   : > { %700 = vmatpush.bf16.msra.mxu1 %v1114_v47  ;;  %1153 = vmatpush.bf16.msra.mxu3 %v1114_v47 }
  0xe2   : > { %561 = vmatpush.bf16.msra.mxu0 %v1104_v36  ;;  %1146 = vmatpush.bf16.msra.mxu2 %v1104_v36 }
  0xe4   : > { %701 = vmatpush.bf16.msra.mxu1 %v1113_v50  ;;  %1154 = vmatpush.bf16.msra.mxu3 %v1113_v50 }
  0xe6   : > { %562 = vmatpush.bf16.msra.mxu0 %v1103_v37  ;;  %1147 = vmatpush.bf16.msra.mxu2 %v1103_v37  ;;  %v610_v37 = vld [vmem:[%s1607_s4 + $0x20] sm:$0xff] }
  0xe8   : > { %702 = vmatpush.bf16.msra.mxu1 %v1112_v53  ;;  %1155 = vmatpush.bf16.msra.mxu3 %v1112_v53 }
  0xea   : > { %563 = vmatpush.bf16.msra.mxu0 %v1102_v38  ;;  %1148 = vmatpush.bf16.msra.mxu2 %v1102_v38 }
  0xec   : > { %703 = vmatpush.bf16.msra.mxu1 %v1111_v54  ;;  %1156 = vmatpush.bf16.msra.mxu3 %v1111_v54 }
  0xee   : > { %564 = vmatpush.bf16.msra.mxu0 %v1101_v39  ;;  %1149 = vmatpush.bf16.msra.mxu2 %v1101_v39 }
  0xf0   : > { %704 = vmatpush.bf16.msra.mxu1 %v1110_v55  ;;  %1157 = vmatpush.bf16.msra.mxu3 %v1110_v55  ;;  %v613_v55 = vld [vmem:[%s1607_s4 + $0x38] sm:$0xff] }
  0xf1   : > { %565 = vmatmul.bf16.vlgmr.msra.gmra.mxu0 %v1093_v40  ;;  %585 = vmatmul.bf16.vlgmr.msra.gmra.mxu2 %v1097_v41  ;;  %v617_v40 = vld [vmem:[%s1607_s4 + $0x58] sm:$0xff] }
 0x101   : > { %570 = vmatmul.bf16.gmra.mxu0 %v1094_v42  ;;  %590 = vmatmul.bf16.gmra.mxu2 %v1098_v43  ;;  %v611_v43 = vld [vmem:[%s1607_s4 + $0x28] sm:$0xff] }
 0x111   : > { %575 = vmatmul.bf16.gmra.mxu0 %v1095_v48  ;;  %595 = vmatmul.bf16.gmra.mxu2 %v1099_v49  ;;  %v612_v49 = vld [vmem:[%s1607_s4 + $0x30] sm:$0xff] }
 0x121   : > { %580 = vmatmul.bf16.gmra.mxu0 %v1096_v51  ;;  %600 = vmatmul.bf16.gmra.mxu2 %v1100_v52  ;;  %v619_v52 = vld [vmem:[%s1607_s4 + $0x68] sm:$0xff] }
 0x16e   : > { %v566_v56 = vpop.f32.mrf.mxu0 }
 0x174   : > { %v586_v57 = vpop.f32.mrf.mxu2 }
 0x176   : > { %v568_v58 = vpop.f32.mrf.mxu0 }
 0x177   : > { %v622_v59 = vpack.c.bf16 %v568_v58, %v566_v56  ;;  %v620_v58 = vld [vmem:[%s1607_s4 + $0x70] sm:$0xff] }
 0x179   : > { %705 = vmatmul.bf16.vlgmr.msra.gmra.mxu1 %v622_v59 }
 0x17c   : > { %v588_v60 = vpop.f32.mrf.mxu2 }
 0x17d   : > { %v626_v61 = vpack.c.bf16 %v588_v60, %v586_v57 }
 0x17e   : > { %v571_v62 = vpop.f32.mrf.mxu0 }
 0x17f   : > { %725 = vmatmul.bf16.vlgmr.msra.gmra.mxu3 %v626_v61  ;;  %v621_v61 = vld [vmem:[%s1607_s4 + $0x78] sm:$0xff] }
 0x184   : > { %v591_v63 = vpop.f32.mrf.mxu2 }
 0x186   : > { %v573_v0 = vpop.f32.mrf.mxu0 }
 0x187   : > { %v623_v1 = vpack.c.bf16 %v573_v0, %v571_v62 }
 0x189   : > { %710 = vmatmul.bf16.gmra.mxu1 %v623_v1 }
 0x18c   : > { %v593_v2 = vpop.f32.mrf.mxu2 }
 0x18d   : > { %v627_v3 = vpack.c.bf16 %v593_v2, %v591_v63 }
 0x18e   : > { %v576_v4 = vpop.f32.mrf.mxu0 }
 0x18f   : > { %730 = vmatmul.bf16.gmra.mxu3 %v627_v3 }
 0x194   : > { %v596_v5 = vpop.f32.mrf.mxu2 }
 0x196   : > { %v578_v6 = vpop.f32.mrf.mxu0 }
 0x197   : > { %v624_v7 = vpack.c.bf16 %v578_v6, %v576_v4 }
 0x199   : > { %715 = vmatmul.bf16.gmra.mxu1 %v624_v7 }
 0x19c   : > { %v598_v8 = vpop.f32.mrf.mxu2 }
 0x19d   : > { %v628_v9 = vpack.c.bf16 %v598_v8, %v596_v5 }
 0x19e   : > { %v581_v10 = vpop.f32.mrf.mxu0 }
 0x19f   : > { %735 = vmatmul.bf16.gmra.mxu3 %v628_v9 }
 0x1a4   : > { %v601_v11 = vpop.f32.mrf.mxu2 }
 0x1a6   : > { %v583_v12 = vpop.f32.mrf.mxu0 }
 0x1a7   : > { %v625_v13 = vpack.c.bf16 %v583_v12, %v581_v10 }
 0x1a9   : > { %720 = vmatmul.bf16.gmra.mxu1 %v625_v13 }
 0x1ac   : > { %v603_v14 = vpop.f32.mrf.mxu2 }
 0x1ad   : > { %v629_v15 = vpack.c.bf16 %v603_v14, %v601_v11 }
 0x1af   : > { %740 = vmatmul.bf16.gmra.mxu3 %v629_v15 }
 0x1f6   : > { %v706_v17 = vpop.f32.mrf.mxu1 }
 0x1f7   : > { %v746_v18 = vadd.f32 %v706_v17, %v606_v16 }
 0x1f9   : > { %762 = vst [vmem:[%s1607_s4] sm:$0xff] %v746_v18 }
 0x1fe   : > { %v708_v20 = vpop.f32.mrf.mxu1 }
 0x1ff   : > { %v747_v21 = vadd.f32 %v708_v20, %v607_v19 }
 0x201   : > { %763 = vst [vmem:[%s1607_s4 + $0x8] sm:$0xff] %v747_v21 }
 0x202   : > { %v726_v23 = vpop.f32.mrf.mxu3 }
 0x203   : > { %v754_v24 = vadd.f32 %v726_v23, %v614_v22 }
 0x205   : > { %770 = vst [vmem:[%s1607_s4 + $0x40] sm:$0xff] %v754_v24 }
 0x206   : > { %v711_v26 = vpop.f32.mrf.mxu1 }
 0x207   : > { %v748_v27 = vadd.f32 %v711_v26, %v608_v25 }
 0x209   : > { %764 = vst [vmem:[%s1607_s4 + $0x10] sm:$0xff] %v748_v27 }
 0x20a   : > { %v728_v29 = vpop.f32.mrf.mxu3 }
 0x20b   : > { %v755_v30 = vadd.f32 %v728_v29, %v615_v28 }
 0x20d   : > { %771 = vst [vmem:[%s1607_s4 + $0x48] sm:$0xff] %v755_v30 }
 0x20e   : > { %v713_v32 = vpop.f32.mrf.mxu1 }
 0x20f   : > { %v749_v33 = vadd.f32 %v713_v32, %v609_v31 }
 0x211   : > { %765 = vst [vmem:[%s1607_s4 + $0x18] sm:$0xff] %v749_v33 }
 0x212   : > { %v731_v35 = vpop.f32.mrf.mxu3 }
 0x213   : > { %v756_v36 = vadd.f32 %v731_v35, %v616_v34 }
 0x215   : > { %772 = vst [vmem:[%s1607_s4 + $0x50] sm:$0xff] %v756_v36 }
 0x216   : > { %v716_v38 = vpop.f32.mrf.mxu1 }
 0x217   : > { %v750_v39 = vadd.f32 %v716_v38, %v610_v37 }
 0x219   : > { %766 = vst [vmem:[%s1607_s4 + $0x20] sm:$0xff] %v750_v39 }
 0x21a   : > { %v733_v41 = vpop.f32.mrf.mxu3 }
 0x21b   : > { %v757_v42 = vadd.f32 %v733_v41, %v617_v40 }
 0x21d   : > { %773 = vst [vmem:[%s1607_s4 + $0x58] sm:$0xff] %v757_v42 }
 0x21e   : > { %v718_v44 = vpop.f32.mrf.mxu1 }
 0x21f   : > { %v751_v45 = vadd.f32 %v718_v44, %v611_v43 }
 0x221   : > { %767 = vst [vmem:[%s1607_s4 + $0x28] sm:$0xff] %v751_v45 }
 0x222   : > { %v736_v47 = vpop.f32.mrf.mxu3 }
 0x223   : > { %v758_v48 = vadd.f32 %v736_v47, %v618_v46 }
 0x225   : > { %774 = vst [vmem:[%s1607_s4 + $0x60] sm:$0xff] %v758_v48 }
 0x226   : > { %v721_v50 = vpop.f32.mrf.mxu1 }
 0x227   : > { %v752_v51 = vadd.f32 %v721_v50, %v612_v49 }
 0x229   : > { %768 = vst [vmem:[%s1607_s4 + $0x30] sm:$0xff] %v752_v51 }
 0x22a   : > { %v738_v53 = vpop.f32.mrf.mxu3 }
 0x22b   : > { %v759_v54 = vadd.f32 %v738_v53, %v619_v52 }
 0x22d   : > { %775 = vst [vmem:[%s1607_s4 + $0x68] sm:$0xff] %v759_v54 }
 0x22e   : > { %v723_v56 = vpop.f32.mrf.mxu1 }
 0x22f   : > { %v753_v57 = vadd.f32 %v723_v56, %v613_v55 }
 0x231   : > { %769 = vst [vmem:[%s1607_s4 + $0x38] sm:$0xff] %v753_v57 }
 0x232   : > { %v741_v59 = vpop.f32.mrf.mxu3 }
 0x233   : > { %v760_v60 = vadd.f32 %v741_v59, %v620_v58 }
 0x235   : > { %776 = vst [vmem:[%s1607_s4 + $0x70] sm:$0xff] %v760_v60 }
 0x239   : > { %781 = sbr.rel (%p1071_p6) target bundleno = 593 (0x251), region = 44 }
 0x23a   : > { %v743_v62 = vpop.f32.mrf.mxu3 }
 0x23b   : > { %v761_v63 = vadd.f32 %v743_v62, %v621_v61 }
 0x23d   : > { %777 = vst [vmem:[%s1607_s4 + $0x78] sm:$0xff] %v761_v63 }
 0x23e   : > { %v782_v0 = vld [vmem:[%s1607_s4] sm:$0xff]  ;;  %v783_v1 = vld [vmem:[%s1607_s4 + $0x8] sm:$0xff]  ;;  %v784_v2 = vld [vmem:[%s1607_s4 + $0x10] sm:$0xff] }
 0x23f   : > { %v798_v3 = vmax.f32 %v782_v0, 0.0  ;;  %v799_v4 = vmax.f32 %v783_v1, 0.0  ;;  %v800_v5 = vmax.f32 %v784_v2, 0.0  ;;  %v785_v6 = vld [vmem:[%s1607_s4 + $0x18] sm:$0xff]  ;;  %v786_v7 = vld [vmem:[%s1607_s4 + $0x20] sm:$0xff]  ;;  %v787_v8 = vld [vmem:[%s1607_s4 + $0x28] sm:$0xff] }
 0x240   : > { %v801_v9 = vmax.f32 %v785_v6, 0.0  ;;  %v788_v10 = vld [vmem:[%s1607_s4 + $0x30] sm:$0xff]  ;;  %v802_v11 = vmax.f32 %v786_v7, 0.0  ;;  %v789_v12 = vld [vmem:[%s1607_s4 + $0x38] sm:$0xff]  ;;  %v803_v13 = vmax.f32 %v787_v8, 0.0  ;;  %v790_v14 = vld [vmem:[%s1607_s4 + $0x40] sm:$0xff] }
 0x241   : > { %814 = vst [vmem:[%s1607_s4] sm:$0xff] %v798_v3  ;;  %v804_v15 = vmax.f32 %v788_v10, 0.0  ;;  %v791_v16 = vld [vmem:[%s1607_s4 + $0x48] sm:$0xff]  ;;  %v805_v17 = vmax.f32 %v789_v12, 0.0  ;;  %v792_v18 = vld [vmem:[%s1607_s4 + $0x50] sm:$0xff]  ;;  %v806_v19 = vmax.f32 %v790_v14, 0.0  ;;  %v793_v20 = vld [vmem:[%s1607_s4 + $0x58] sm:$0xff] }
 0x242   : > { %815 = vst [vmem:[%s1607_s4 + $0x8] sm:$0xff] %v799_v4  ;;  %v807_v21 = vmax.f32 %v791_v16, 0.0  ;;  %v794_v22 = vld [vmem:[%s1607_s4 + $0x60] sm:$0xff]  ;;  %v808_v23 = vmax.f32 %v792_v18, 0.0  ;;  %v795_v24 = vld [vmem:[%s1607_s4 + $0x68] sm:$0xff]  ;;  %v809_v25 = vmax.f32 %v793_v20, 0.0 }
 0x243   : > { %816 = vst [vmem:[%s1607_s4 + $0x10] sm:$0xff] %v800_v5  ;;  %v796_v26 = vld [vmem:[%s1607_s4 + $0x70] sm:$0xff]  ;;  %v810_v27 = vmax.f32 %v794_v22, 0.0  ;;  %v811_v29 = vmax.f32 %v795_v24, 0.0 }
 0x244   : > { %817 = vst [vmem:[%s1607_s4 + $0x18] sm:$0xff] %v801_v9  ;;  %v797_v28 = vld [vmem:[%s1607_s4 + $0x78] sm:$0xff]  ;;  %v812_v30 = vmax.f32 %v796_v26, 0.0 }
 0x245   : > { %818 = vst [vmem:[%s1607_s4 + $0x20] sm:$0xff] %v802_v11  ;;  %v813_v31 = vmax.f32 %v797_v28, 0.0 }
 0x246   : > { %819 = vst [vmem:[%s1607_s4 + $0x28] sm:$0xff] %v803_v13 }
 0x247   : > { %820 = vst [vmem:[%s1607_s4 + $0x30] sm:$0xff] %v804_v15 }
 0x248   : > { %821 = vst [vmem:[%s1607_s4 + $0x38] sm:$0xff] %v805_v17 }
 0x249   : > { %822 = vst [vmem:[%s1607_s4 + $0x40] sm:$0xff] %v806_v19 }
 0x24a   : > { %823 = vst [vmem:[%s1607_s4 + $0x48] sm:$0xff] %v807_v21 }
 0x24b   : > { %824 = vst [vmem:[%s1607_s4 + $0x50] sm:$0xff] %v808_v23 }
 0x24c   : > { %825 = vst [vmem:[%s1607_s4 + $0x58] sm:$0xff] %v809_v25 }
 0x24d   : > { %826 = vst [vmem:[%s1607_s4 + $0x60] sm:$0xff] %v810_v27 }
 0x24e   : > { %827 = vst [vmem:[%s1607_s4 + $0x68] sm:$0xff] %v811_v29 }
 0x24f   : > { %828 = vst [vmem:[%s1607_s4 + $0x70] sm:$0xff] %v812_v30 }
 0x250   : > { %829 = vst [vmem:[%s1607_s4 + $0x78] sm:$0xff] %v813_v31 }
 0x251 PF: > { %s14_s17 = sadd.s32 1, %s1204_s17   ;;  %s1608_s15 = smov %s1200_s16 }
 0x252   : > { %p11_p7 = scmp.ge.s32.totalorder %s14_s17, 6   ;;  %s1609_s16 = smov %s1611_s18 }
 0x254   :  { %13 = sbr.rel (!%p11_p7) target bundleno = 2 (0x2), region = 76 }

</bundles_post_ra>
